<compile_context>
chip_gen: v5e
topology: v5e:2x2
jax: 0.10.0
libtpu: 0.0.40
codegen_flags: <defaults>
</compile_context>

<pallas_src>
import functools

import jax
import jax.numpy as jnp
from jax.experimental import pallas as pl
from jax.experimental.pallas import tpu as pltpu


def _per_sample_bce_kernel(logits_ref, target_ref, psum_ref, *, B, C, TB, TC):
    i = pl.program_id(0)          # batch-tile index  ("parallel")
    j = pl.program_id(1)          # class-tile index  ("arbitrary", innermost)

    # Cast to f32 at load: halves DMA bytes for bf16 inputs, keeps log1p/exp
    # precision in f32.
    x = logits_ref[...].astype(jnp.float32)      # (TB, TC)
    t = target_ref[...].astype(jnp.float32)      # (TB, TC)

    # binary_cross_entropy_with_logits, reduction='none':
    #   l = max(x, 0) - x*t + log1p(exp(-|x|))    (exactly 2 EUP ops / elem)
    bce = jnp.maximum(x, 0.0) - x * t + jnp.log1p(jnp.exp(-jnp.abs(x)))

    # Mask padded rows/cols of partial edge tiles (trace-time no-op when the
    # tile sizes divide B and C exactly, as in the demo below).
    if (B % TB != 0) or (C % TC != 0):
        row = jax.lax.broadcasted_iota(jnp.int32, (TB, TC), 0) + i * TB
        col = jax.lax.broadcasted_iota(jnp.int32, (TB, TC), 1) + j * TC
        bce = jnp.where((row < B) & (col < C), bce, 0.0)

    # Per-sample partial sum over this C tile.  For wide tiles do the lane
    # reduction on the (otherwise idle) MXU so the XLU stays free and it
    # overlaps the EUP-heavy BCE math; for narrow tiles the XLU sum is fine.
    if TC >= 256:
        ones = jnp.ones((TC, 1), dtype=jnp.float32)
        partial = jnp.dot(bce, ones, preferred_element_type=jnp.float32)
    else:
        partial = jnp.sum(bce, axis=1, keepdims=True)            # (TB, 1)

    @pl.when(j == 0)
    def _():
        psum_ref[...] = jnp.zeros_like(psum_ref)

    psum_ref[...] += partial

    @pl.when(j == pl.num_programs(1) - 1)
    def _():
        psum_ref[...] *= jnp.float32(1.0 / C)     # sum -> mean over true C


def _finalize_kernel(alpha_ref, per_sample_ref, noisy_ref, loss_ref):
    alpha = alpha_ref[0]                  # f32 scalar from SMEM
    per_sample = per_sample_ref[...]      # (B, 1) f32
    noisy = noisy_ref[...]                # (B, 1) f32 in {0, 1}

    thresh = alpha * jnp.max(per_sample)
    outlier = (per_sample > thresh).astype(jnp.float32) * noisy
    keep = (outlier == 0.0).astype(jnp.float32)

    total = jnp.sum(per_sample * keep)
    count = jnp.sum(keep)
    # NOTE: if every sample is flagged, count == 0 and this is NaN -- same
    # semantics as the PyTorch module's mean() over an empty selection.
    loss_ref[0, 0] = total / count


def _choose_tiles(B, C):
    """~1 MiB (f32) per input tile: fits v5e's 16 MiB scoped VMEM with double
    buffering and sits on the flat part of the measured v6e tile-size curve."""
    TC = C if C <= 1024 else 1024                      # multiple of 128 when tiled
    target_elems = 1 << 18                             # ~256K elems / tile
    tb = max(8, min(B, (target_elems // TC) // 8 * 8))
    TB = B if tb >= B else tb                          # full B, or a multiple of 8
    return TB, TC


def bce_max_outlier_loss(output, target, noisy, alpha=0.8):
    """output, target: (B, C) in any float dtype; noisy: (B,). Scalar f32 loss."""
    B, C = output.shape
    TB, TC = _choose_tiles(B, C)
    grid = (pl.cdiv(B, TB), pl.cdiv(C, TC))

    # ---- pass 1: per-sample mean BCE, tiled over (B, C) -------------------
    per_sample = pl.pallas_call(
        functools.partial(_per_sample_bce_kernel, B=B, C=C, TB=TB, TC=TC),
        out_shape=jax.ShapeDtypeStruct((B, 1), jnp.float32),
        grid=grid,
        in_specs=[
            pl.BlockSpec((TB, TC), lambda i, j: (i, j)),   # logits, native dtype
            pl.BlockSpec((TB, TC), lambda i, j: (i, j)),   # targets, native dtype
        ],
        out_specs=pl.BlockSpec((TB, 1), lambda i, j: (i, 0)),
        compiler_params=pltpu.CompilerParams(
            dimension_semantics=("parallel", "arbitrary")),
    )(output, target)

    # ---- pass 2: threshold / mask / masked mean (O(B) work, single step) --
    alpha_arr = jnp.asarray([alpha], dtype=jnp.float32)
    noisy2d = noisy.astype(jnp.float32).reshape(B, 1)

    loss = pl.pallas_call(
        _finalize_kernel,
        out_shape=jax.ShapeDtypeStruct((1, 1), jnp.float32),
        in_specs=[
            pl.BlockSpec(memory_space=pltpu.MemorySpace.SMEM),   # alpha
            pl.BlockSpec(memory_space=pltpu.MemorySpace.VMEM),   # per_sample
            pl.BlockSpec(memory_space=pltpu.MemorySpace.VMEM),   # noisy
        ],
        out_specs=pl.BlockSpec(memory_space=pltpu.MemorySpace.VMEM),
    )(alpha_arr, per_sample, noisy2d)
    return loss[0, 0]


def _reference(output, target, noisy, alpha=0.8):
    # pure-JAX reference mirroring the PyTorch module
    x = output.astype(jnp.float32)
    t = target.astype(jnp.float32)
    bce = jnp.maximum(x, 0.0) - x * t + jnp.log1p(jnp.exp(-jnp.abs(x)))
    loss = bce.mean(axis=1)
    outlier_mask = (loss > alpha * loss.max()).astype(jnp.float32) \
        * noisy.astype(jnp.float32)
    keep = (outlier_mask == 0).astype(jnp.float32)
    return jnp.sum(loss * keep) / jnp.sum(keep)


if __name__ == "__main__":
    key = jax.random.PRNGKey(0)
    k1, k2, k3 = jax.random.split(key, 3)

    B, C = 8, 32
    # logits / targets in bf16: the kernel upcasts on-chip (half the DMA bytes).
    output = (jax.random.normal(k1, (B, C), dtype=jnp.float32) * 2.0).astype(jnp.bfloat16)
    target = jax.random.bernoulli(k2, 0.5, (B, C)).astype(jnp.bfloat16)
    noisy = jax.random.bernoulli(k3, 0.5, (B,)).astype(jnp.float32)

    loss = jax.block_until_ready(bce_max_outlier_loss(output, target, noisy, alpha=0.8))
    ref = jax.block_until_ready(_reference(output, target, noisy, alpha=0.8))
    assert jnp.allclose(loss, ref, rtol=1e-5, atol=1e-5), (loss, ref)

    print("KERNEL_OK")
</pallas_src>

<mosaic_0001>
module attributes {stable_mosaic.version = 11 : i64} {
  func.func @_per_sample_bce_kernel(%arg0: i32, %arg1: i32, %arg2: memref<8x32xbf16, #tpu.memory_space<vmem>>, %arg3: memref<8x32xbf16, #tpu.memory_space<vmem>>, %arg4: memref<8x1xf32, #tpu.memory_space<vmem>>) attributes {dimension_semantics = [#tpu.dimension_semantics<parallel>, #tpu.dimension_semantics<arbitrary>], iteration_bounds = array<i64: 1, 1>, scalar_prefetch = 0 : i64, scratch_operands = 0 : i64, tpu.core_type = #tpu.core_type<tc>, window_params = [{transform_indices = @transform_0, window_bounds = array<i64: 8, 32>}, {transform_indices = @transform_1, window_bounds = array<i64: 8, 32>}, {transform_indices = @transform_2, window_bounds = array<i64: 8, 1>}]} {
    %c0 = arith.constant 0 : index
    %c0_0 = arith.constant 0 : index
    %0 = vector.load %arg2[%c0, %c0_0] : memref<8x32xbf16, #tpu.memory_space<vmem>>, vector<8x32xbf16>
    %1 = arith.extf %0 : vector<8x32xbf16> to vector<8x32xf32>
    %c0_1 = arith.constant 0 : index
    %c0_2 = arith.constant 0 : index
    %2 = vector.load %arg3[%c0_1, %c0_2] : memref<8x32xbf16, #tpu.memory_space<vmem>>, vector<8x32xbf16>
    %3 = arith.extf %2 : vector<8x32xbf16> to vector<8x32xf32>
    %cst = arith.constant 0.000000e+00 : f32
    %4 = vector.broadcast %cst : f32 to vector<8x32xf32>
    %5 = arith.maximumf %1, %4 : vector<8x32xf32>
    %6 = arith.mulf %1, %3 : vector<8x32xf32>
    %7 = arith.subf %5, %6 : vector<8x32xf32>
    %8 = math.absf %1 : vector<8x32xf32>
    %cst_3 = arith.constant 0.000000e+00 : f32
    %9 = vector.broadcast %cst_3 : f32 to vector<8x32xf32>
    %10 = arith.subf %9, %8 : vector<8x32xf32>
    %11 = math.exp %10 : vector<8x32xf32>
    %12 = math.log1p %11 : vector<8x32xf32>
    %13 = arith.addf %7, %12 : vector<8x32xf32>
    %cst_4 = arith.constant dense<0.000000e+00> : vector<8xf32>
    %14 = vector.multi_reduction <add>, %13, %cst_4 [1] : vector<8x32xf32> to vector<8xf32>
    %15 = vector.shape_cast %14 : vector<8xf32> to vector<8x1xf32>
    %c0_i32 = arith.constant 0 : i32
    %16 = arith.cmpi eq, %arg1, %c0_i32 : i32
    %17 = arith.extui %16 : i1 to i32
    %c0_i32_5 = arith.constant 0 : i32
    %18 = arith.cmpi ne, %17, %c0_i32_5 : i32
    scf.if %18 {
      %cst_12 = arith.constant 0.000000e+00 : f32
      %25 = vector.broadcast %cst_12 : f32 to vector<8x1xf32>
      %c0_13 = arith.constant 0 : index
      %c0_14 = arith.constant 0 : index
      %26 = vector.load %arg4[%c0_13, %c0_14] : memref<8x1xf32, #tpu.memory_space<vmem>>, vector<8x1xf32>
      tpu.vector_store %arg4[%c0_13, %c0_14], %25 {strides = array<i32>} : memref<8x1xf32, #tpu.memory_space<vmem>>, vector<8x1xf32>,
    } else {
    }
    %c0_6 = arith.constant 0 : index
    %c0_7 = arith.constant 0 : index
    %19 = vector.load %arg4[%c0_6, %c0_7] : memref<8x1xf32, #tpu.memory_space<vmem>>, vector<8x1xf32>
    %20 = arith.addf %19, %15 : vector<8x1xf32>
    %c0_8 = arith.constant 0 : index
    %c0_9 = arith.constant 0 : index
    %21 = vector.load %arg4[%c0_8, %c0_9] : memref<8x1xf32, #tpu.memory_space<vmem>>, vector<8x1xf32>
    tpu.vector_store %arg4[%c0_8, %c0_9], %20 {strides = array<i32>} : memref<8x1xf32, #tpu.memory_space<vmem>>, vector<8x1xf32>,
    %c0_i32_10 = arith.constant 0 : i32
    %22 = arith.cmpi eq, %arg1, %c0_i32_10 : i32
    %23 = arith.extui %22 : i1 to i32
    %c0_i32_11 = arith.constant 0 : i32
    %24 = arith.cmpi ne, %23, %c0_i32_11 : i32
    scf.if %24 {
      %c0_12 = arith.constant 0 : index
      %c0_13 = arith.constant 0 : index
      %25 = vector.load %arg4[%c0_12, %c0_13] : memref<8x1xf32, #tpu.memory_space<vmem>>, vector<8x1xf32>
      %cst_14 = arith.constant 3.125000e-02 : f32
      %26 = vector.broadcast %cst_14 : f32 to vector<8x1xf32>
      %27 = arith.mulf %25, %26 : vector<8x1xf32>
      %c0_15 = arith.constant 0 : index
      %c0_16 = arith.constant 0 : index
      %28 = vector.load %arg4[%c0_15, %c0_16] : memref<8x1xf32, #tpu.memory_space<vmem>>, vector<8x1xf32>
      tpu.vector_store %arg4[%c0_15, %c0_16], %27 {strides = array<i32>} : memref<8x1xf32, #tpu.memory_space<vmem>>, vector<8x1xf32>,
    } else {
    }
    return
  }
  func.func @transform_0(%arg0: i32, %arg1: i32) -> (i32, i32) {
    %c0_i32 = arith.constant 0 : i32
    return %arg0, %arg1 : i32, i32
  }
  func.func @transform_1(%arg0: i32, %arg1: i32) -> (i32, i32) {
    %c0_i32 = arith.constant 0 : i32
    return %arg0, %arg1 : i32, i32
  }
  func.func @transform_2(%arg0: i32, %arg1: i32) -> (i32, i32) {
    %c0_i32 = arith.constant 0 : i32
    %c0_i32_0 = arith.constant 0 : i32
    return %arg0, %c0_i32 : i32, i32
  }
}

</mosaic_0001>

<bundles_post_ra>
// kernel: tpu_custom_call.1
= control target key start
LH: loop header
LB: loop body
LE: loop exit
PB: predicated region body
PF: predicated region fallthrough
CT: control target
= control target key end

     0   :  { %7 = vsyncpa [#allocation3], 0  ;;  %s187_s0 = inlined_call_operand.hbm [shape: bf16[8,32], index: 0, kind: input, shape index: {}]   ;;  %s188_s1 = inlined_call_operand.hbm [shape: bf16[8,32], index: 1, kind: input, shape index: {}]   ;;  %s189_s2 = inlined_call_operand.vmem [shape: f32[8,1], index: 2, kind: output, shape index: {}]  }
   0x1   :  { %s14_s11 = sshll.u32 %s187_s0, 4  ;;  %s15_s11 = int_to_ptr.hbm [resolvable:$true] %s14_s11 }
   0x2   :  { %8 = vsyncpa [#allocation5], 0  ;;  %s145_s12 = smov [#allocation2]   ;;  %s25_s16 = sshll.u32 %s188_s1, 4  ;;  %s26_s16 = int_to_ptr.hbm [resolvable:$true] %s25_s16 }
   0x3   :  { %s16_s13 = sshll.u32 %s145_s12, 4  ;;  %s146_s17 = smov [#allocation4]   ;;  %s17_s13 = int_to_ptr.vmem [resolvable:$true] %s16_s13 }
   0x4   :  { %19 = dma.hbm_to_vmem [thread:$0]  %s15_s11, 64, %s17_s13, [#allocation3]  }
   0x5   :  { %s27_s18 = sshll.u32 %s146_s17, 4  ;;  %s28_s18 = int_to_ptr.vmem [resolvable:$true] %s27_s18 }
   0x6   :  { %30 = dma.hbm_to_vmem [thread:$0]  %s26_s16, 64, %s28_s18, [#allocation5]  }
   0x7   :  { %141 = dma.done.wait [#allocation3], 64  }
   0x8   :  { %142 = vsyncadd [#allocation3], 4294967232 }
   0x9   :  { %143 = dma.done.wait [#allocation5], 64  }
   0xa   :  { %144 = vsyncadd [#allocation5], 4294967232  ;;  %vm68_vm0 = vcmask 7168   ;;  %v147_v0 = vmov 0.0   ;;  %v39_v1 = vld [vmem:[#allocation2] sm:$0xf] }
   0xb   :  { %69 = vst.msk [vmem:[%s189_s2] sm:$0xff] %vm68_vm0, %v147_v0  ;;  %v40_v2 = vunpack.c.l.bf16 %v39_v1  ;;  %v41_v6 = vld [vmem:[#allocation4] sm:$0xf]  ;;  %vm60_vm2 = vcmask 261120  }
   0xc   :  { %v42_v8 = vunpack.c.l.bf16 %v41_v6 }
   0xd   :  { %v46_v3 = vand.u32 2147483647, %v40_v2  ;;  %v43_v12 = vmax.f32 %v40_v2, 0.0 }
   0xe   :  { %v44_v13 = vmul.f32 %v42_v8, %v40_v2 }
   0xf   :  { %v47_v4 = vsub.f32 0.0, %v46_v3 }
  0x10   :  { %v45_v17 = vsub.f32 %v43_v12, %v44_v13 }
  0x11   :  { %v48_v5 = vmul.f32 1.442695, %v47_v4 }
  0x12   :  { %v70_v22 = vld [vmem:[%s189_s2] sm:$0xff] }
  0x13   :  { %89 = vpow2.f32 %v48_v5 }
  0x19   :  { %v90_v7 = vpop.eup %89 }
  0x1a   :  { %v50_v9 = vadd.f32 1.0, %v90_v7  ;;  %v53_v10 = vmul.f32 -0.5, %v90_v7  ;;  %v56_v14 = vand.u32 2147483647, %v90_v7 }
  0x1c   :  { %91 = vlog2.f32 %v50_v9  ;;  %v54_v11 = vadd.f32 1.0, %v53_v10  ;;  %vm57_vm1 = vcmp.lt.f32.partialorder %v56_v14, 0.0004427343 }
  0x1e   :  { %v55_v15 = vmul.f32 %v90_v7, %v54_v11 }
  0x22   :  { %v92_v16 = vpop.eup %91 }
  0x23   :  { %v52_v18 = vmul.f32 0.6931472, %v92_v16 }
  0x25   :  { %v58_v19 = vsel %vm57_vm1, %v55_v15, %v52_v18 }
  0x26   :  { %v59_v20 = vadd.f32 %v58_v19, %v45_v17 }
  0x28   :  { %v61_v21 = vsel %vm60_vm2, %v59_v20, 0.0 }
  0x29   :  { %62 = vadd.xlane.f32.xlu0 %v61_v21 }
  0x9c   :  { %v63_v23 = vpop.xlane.xlu0 %62 }
  0x9d   :  { %v71_v24 = vadd.f32 %v70_v22, %v63_v23 }
  0x9f   :  { %73 = vst.msk [vmem:[%s189_s2] sm:$0xff] %vm68_vm0, %v71_v24 }
  0xa6   :  { %v77_v25 = vld [vmem:[%s189_s2] sm:$0xff] }
  0xa7   :  { %v78_v26 = vmul.f32 0.03125, %v77_v25 }
  0xa9   :  { %79 = vst.msk [vmem:[%s189_s2] sm:$0xff] %vm68_vm0, %v78_v26 }
  0xaa   :  { %84 = vsyncpa [#allocation3], 1 }
  0xab   :  { %85 = vsyncpa [#allocation5], 1 }

</bundles_post_ra>
